<compile_context>
chip_gen: v7x
topology: tpu7x:2x2x1
jax: 0.10.0
libtpu: 0.0.40
codegen_flags: <defaults>
</compile_context>

<pallas_src>
import functools

import jax
import jax.numpy as jnp
from jax import lax
from jax.experimental import pallas as pl
from jax.experimental.pallas import tpu as pltpu


def _num_groups(c):
    # Mirrors Normalize(): largest group count in [32,16,8,4,2,1] dividing c.
    for g in (32, 16, 8, 4, 2, 1):
        if c % g == 0:
            return g
    return 1


def _silu(v):
    # SiLU via tanh: sigmoid(v) = 0.5*(tanh(v/2)+1) -> a single EUP op per
    # element (vs exp + reciprocal = 2) and exact (no approx-recip error
    # propagating into the GroupNorm2 statistics).
    return v * (0.5 * jnp.tanh(0.5 * v) + 0.5)


def _conv1d_k3(a, a_left, a_right, w_ref, *, fuse_taps):
    """k=3, stride=1, padding=1 conv restricted to one L-tile.

    a:       (Cin, TL) conv-input tile, already in the MXU dtype.
    a_left:  (Cin, 1) conv-input column just left of the tile (zero at the
             global left edge, matching the conv's zero padding).
    a_right: (Cin, 1) column just right of the tile (zero at global edge).
    w_ref:   fused:   (Cout, 3*Cin) = [W[:,:,0] | W[:,:,1] | W[:,:,2]]
             unfused: (3, Cout, Cin) with w_ref[k] == W_torch[:, :, k].

    The +/-1 taps splice the halo column with a static lane slice of the tile
    (a single lane shift each; no pltpu.roll, no iota/select boundary fixups).
    """
    tl_ = a.shape[-1]
    a_m1 = jnp.concatenate([a_left, a[:, : tl_ - 1]], axis=1)   # a[:, t-1]
    a_p1 = jnp.concatenate([a[:, 1:], a_right], axis=1)         # a[:, t+1]
    if fuse_taps:
        # Single MXU matmul with K = 3*Cin (fills the 256-deep contraction on
        # v6e/v7x for small/medium C and removes two full-tile VPU adds).
        stacked = jnp.concatenate([a_m1, a, a_p1], axis=0)      # (3*Cin, TL)
        return jnp.dot(w_ref[...], stacked, preferred_element_type=jnp.float32)
    acc = jnp.dot(w_ref[0], a_m1, preferred_element_type=jnp.float32)
    acc = acc + jnp.dot(w_ref[1], a, preferred_element_type=jnp.float32)
    acc = acc + jnp.dot(w_ref[2], a_p1, preferred_element_type=jnp.float32)
    return acc


def _pass1_kernel(x_ref, xh_ref, pp_ref, w_ref, h_ref, aux_ref, *,
                  mxu_dtype, fuse_taps):
    # in_layers: GroupNorm1 (folded scale/shift) -> SiLU -> Conv1d(k=3,pad=1),
    # plus the hoisted (emb-linear + conv1 bias) add. Also emits the per-tile
    # GN2 partial statistics and this tile's first/last h columns.
    x = x_ref[0].astype(jnp.float32)                       # (C, TL)
    pp = pp_ref[0]                                         # (C, 3) f32
    scale, shift, bias = pp[:, 0:1], pp[:, 1:2], pp[:, 2:3]

    # GN1 + SiLU, cast once to the MXU dtype.
    a = _silu(x * scale + shift).astype(mxu_dtype)         # (C, TL)

    hl = xh_ref[0, 0, :, 0:1].astype(jnp.float32)          # (C, 1) halo cols
    hr = xh_ref[0, 0, :, 1:2].astype(jnp.float32)
    li = pl.program_id(1)
    # The conv's zero padding applies to the (normalized, SiLU'd) conv input,
    # so zero the halo contribution at the global edges AFTER GN1 + SiLU.
    a_l = jnp.where(li == 0, 0.0,
                    _silu(hl * scale + shift)).astype(mxu_dtype)
    a_r = jnp.where(li == pl.num_programs(1) - 1, 0.0,
                    _silu(hr * scale + shift)).astype(mxu_dtype)

    h = _conv1d_k3(a, a_l, a_r, w_ref, fuse_taps=fuse_taps) + bias   # f32
    h_ref[0] = h.astype(h_ref.dtype)                       # bf16 store on fast path

    tl_ = h.shape[-1]
    # One packed store: [sum(h), sum(h^2), h[:, 0], h[:, TL-1]]  -> (Cout, 4).
    aux_ref[0, 0] = jnp.concatenate(
        [jnp.sum(h, axis=1, keepdims=True),
         jnp.sum(h * h, axis=1, keepdims=True),
         h[:, 0:1], h[:, tl_ - 1:tl_]], axis=1)


def _pass2_kernel(h_ref, hh_ref, pp_ref, w_ref, x_ref, out_ref, *,
                  mxu_dtype, fuse_taps):
    # out_layers: GroupNorm2 (folded) -> SiLU -> Dropout(identity) -> Conv1d,
    # then the identity skip connection (x + h).
    h = h_ref[0].astype(jnp.float32)                       # (Cout, TL)
    pp = pp_ref[0]                                         # (Cout, 3) f32
    scale, shift, bias = pp[:, 0:1], pp[:, 1:2], pp[:, 2:3]

    g = _silu(h * scale + shift).astype(mxu_dtype)

    hl = hh_ref[0, 0, :, 0:1]                              # f32 halo cols
    hr = hh_ref[0, 0, :, 1:2]
    li = pl.program_id(1)
    g_l = jnp.where(li == 0, 0.0,
                    _silu(hl * scale + shift)).astype(mxu_dtype)
    g_r = jnp.where(li == pl.num_programs(1) - 1, 0.0,
                    _silu(hr * scale + shift)).astype(mxu_dtype)

    # TODO(synk): Dropout is identity here (inference semantics; p only matters in training).
    y = _conv1d_k3(g, g_l, g_r, w_ref, fuse_taps=fuse_taps) + bias
    out_ref[0] = (x_ref[0].astype(jnp.float32) + y).astype(out_ref.dtype)


def _pick_tile(L, B, C, itemsize):
    # Lane-dense tiles (multiples of 128), as large as a modest VMEM budget
    # allows (per-grid-step overhead ~0.35us dominates for small C).  When
    # B == 1 require >=2 tiles so both v7x TensorCores get work.
    min_tiles = 2 if B == 1 else 1
    budget = 24 << 20
    for cand in (1024, 512, 256, 128):
        if L % cand == 0 and L // cand >= min_tiles:
            # x-in + residual tiles (2x double-buffered) + h tile + f32 scratch.
            resident = 4 * C * cand * itemsize + 2 * C * cand * 4 + 8 * C * cand * 4
            if resident <= budget:
                return cand
    return L


def _halo_columns(arr, tl):
    """arr: (B, Ch, L) -> (B, nL, Ch, 2) single-column halos for each L tile."""
    B, Ch, L = arr.shape
    nL = L // tl
    zero = jnp.zeros((B, Ch, 1), arr.dtype)
    if nL == 1:
        left = zero
        right = zero
    else:
        left = jnp.concatenate([zero, arr[:, :, tl - 1:L - 1:tl]], axis=2)   # (B,Ch,nL)
        right = jnp.concatenate([arr[:, :, tl::tl], zero], axis=2)           # (B,Ch,nL)
    return jnp.stack([left, right], axis=-1).transpose(0, 2, 1, 3)           # (B,nL,Ch,2)


def resblock_forward(x, emb, params, *, eps=1e-6, mxu_dtype=jnp.bfloat16, tl=None):
    # eps=1e-6 matches the module's Normalize() (GroupNorm(..., eps=1e-06)).
    B, C, L = x.shape
    Cout = params['conv1_w'].shape[0]
    assert Cout == C, "this kernel implements the identity-skip configuration"
    g1, g2 = _num_groups(C), _num_groups(Cout)

    if tl is None:
        tl = _pick_tile(L, B, C, x.dtype.itemsize)
    assert L % tl == 0, "spatial length must be divisible by the chosen tile"
    nL = L // tl

    f32 = jnp.float32
    # h storage dtype: bf16 on the fast path (halves h HBM write/read); the GN2
    # statistics are taken from the f32 value inside pass 1 before the store.
    h_dtype = f32 if mxu_dtype == jnp.float32 else jnp.bfloat16
    fuse_taps = C < 256

    # Explicit scoped-VMEM limit sized to resident weights + double-buffered
    # tiles (v5e default is only 16 MiB; v7x physical VMEM is 64 MiB).
    w_bytes = jnp.dtype(mxu_dtype).itemsize
    est = (2 * (2 * C * tl * x.dtype.itemsize                 # x tile + residual tile
                + Cout * tl * jnp.dtype(h_dtype).itemsize)    # h tile
           + 2 * 3 * Cout * C * w_bytes                       # resident conv weights
           + 8 * max(C, Cout) * tl * 4)                       # f32 working set
    vmem_limit = int(min(64 << 20, max(32 << 20, 2 * est)))
    cparams = pltpu.CompilerParams(
        dimension_semantics=("parallel", "parallel"),
        vmem_limit_bytes=vmem_limit)

    # ---- GroupNorm1 statistics straight from x (per batch / group); the f32
    # cast fuses into the reductions — no (B,C,L) f32 copy is materialized and
    # x itself (original dtype) is what feeds both kernels.
    xg = x.reshape(B, g1, (C // g1) * L)
    mean1 = jnp.mean(xg, axis=-1, dtype=f32)                              # (B, g1)
    var1 = jnp.mean(jnp.square(xg.astype(f32) - mean1[..., None]), axis=-1)
    inv1 = lax.rsqrt(var1 + eps)
    mean1c = jnp.repeat(mean1, C // g1, axis=1)                           # (B, C)
    inv1c = jnp.repeat(inv1, C // g1, axis=1)
    scale1 = inv1c * params['gn1_w'][None, :].astype(f32)
    shift1 = params['gn1_b'][None, :].astype(f32) - mean1c * scale1

    # ---- emb_layers (SiLU -> Linear) hoisted to one batched GEMM; fold conv1 bias.
    e = emb.astype(f32)
    e = e * jax.nn.sigmoid(e)
    emb_out = e @ params['emb_w'].T.astype(f32) + params['emb_b'][None, :].astype(f32)
    bias1 = emb_out + params['conv1_b'][None, :].astype(f32)              # (B, Cout)
    pp1 = jnp.stack([scale1, shift1, bias1], axis=-1)                     # (B, C, 3)

    # ---- conv weights pre-cast to the MXU dtype (no per-step casts).
    w1t = jnp.transpose(params['conv1_w'], (2, 0, 1)).astype(mxu_dtype)   # (3,Cout,C)
    w2t = jnp.transpose(params['conv2_w'], (2, 0, 1)).astype(mxu_dtype)   # (3,Cout,Cout)
    if fuse_taps:
        w1 = jnp.concatenate([w1t[0], w1t[1], w1t[2]], axis=1)            # (Cout, 3C)
        w2 = jnp.concatenate([w2t[0], w2t[1], w2t[2]], axis=1)
        w1_spec = pl.BlockSpec((Cout, 3 * C), lambda b, l: (0, 0))
        w2_spec = pl.BlockSpec((Cout, 3 * Cout), lambda b, l: (0, 0))
    else:
        w1, w2 = w1t, w2t
        w1_spec = pl.BlockSpec((3, Cout, C), lambda b, l: (0, 0, 0))
        w2_spec = pl.BlockSpec((3, Cout, Cout), lambda b, l: (0, 0, 0))

    xhal = _halo_columns(x, tl)                                           # (B,nL,C,2)

    # ---- pass 1: h = conv1(silu(GN1(x))) + bias1 ; GN2 partials + edge cols.
    kernel1 = functools.partial(_pass1_kernel, mxu_dtype=mxu_dtype,
                                fuse_taps=fuse_taps)
    h, aux = pl.pallas_call(
        kernel1,
        out_shape=(jax.ShapeDtypeStruct((B, Cout, L), h_dtype),
                   jax.ShapeDtypeStruct((B, nL, Cout, 4), f32)),
        grid_spec=pltpu.PrefetchScalarGridSpec(
            num_scalar_prefetch=0,
            grid=(B, nL),
            in_specs=[
                pl.BlockSpec((1, C, tl), lambda b, l: (b, 0, l)),         # x tile
                pl.BlockSpec((1, 1, C, 2), lambda b, l: (b, l, 0, 0)),    # x halos
                pl.BlockSpec((1, C, 3), lambda b, l: (b, 0, 0)),          # packed params
                w1_spec,                                                  # conv1 w
            ],
            out_specs=[
                pl.BlockSpec((1, Cout, tl), lambda b, l: (b, 0, l)),      # h tile
                pl.BlockSpec((1, 1, Cout, 4), lambda b, l: (b, l, 0, 0)), # stats+edges
            ]),
        compiler_params=cparams,
    )(x, xhal, pp1, w1)

    # ---- GroupNorm2 statistics from per-tile partial sums (f32).
    csum = jnp.sum(aux[..., 0:2], axis=1)                                 # (B, Cout, 2)
    n2 = float((Cout // g2) * L)
    gsum = csum[..., 0].reshape(B, g2, Cout // g2).sum(-1)
    gsq = csum[..., 1].reshape(B, g2, Cout // g2).sum(-1)
    mean2 = gsum / n2
    # TODO(synk): E[h^2]-E[h]^2 in f32; switch to a shifted/Welford accumulation
    # if activations develop very large means relative to their spread.
    var2 = jnp.maximum(gsq / n2 - mean2 * mean2, 0.0)
    inv2 = lax.rsqrt(var2 + eps)
    mean2c = jnp.repeat(mean2, Cout // g2, axis=1)
    inv2c = jnp.repeat(inv2, Cout // g2, axis=1)
    scale2 = inv2c * params['gn2_w'][None, :].astype(f32)
    shift2 = params['gn2_b'][None, :].astype(f32) - mean2c * scale2
    bias2 = jnp.broadcast_to(params['conv2_b'][None, :].astype(f32), (B, Cout))
    pp2 = jnp.stack([scale2, shift2, bias2], axis=-1)                     # (B, Cout, 3)

    # ---- pass-2 halos from the edge columns emitted by pass 1 (no gather /
    # concatenate / transpose over the full (B, Cout, L) h between the passes).
    if nL == 1:
        hhal = jnp.zeros((B, 1, Cout, 2), f32)
    else:
        first = aux[..., 2]                                               # (B, nL, Cout)
        last = aux[..., 3]
        zero = jnp.zeros((B, 1, Cout), f32)
        hhal = jnp.stack(
            [jnp.concatenate([zero, last[:, :-1]], axis=1),               # left of tile l
             jnp.concatenate([first[:, 1:], zero], axis=1)], axis=-1)     # right of tile l

    # ---- pass 2: out = x + conv2(silu(GN2(h))).
    kernel2 = functools.partial(_pass2_kernel, mxu_dtype=mxu_dtype,
                                fuse_taps=fuse_taps)
    out = pl.pallas_call(
        kernel2,
        out_shape=jax.ShapeDtypeStruct((B, Cout, L), x.dtype),
        grid_spec=pltpu.PrefetchScalarGridSpec(
            num_scalar_prefetch=0,
            grid=(B, nL),
            in_specs=[
                pl.BlockSpec((1, Cout, tl), lambda b, l: (b, 0, l)),      # h tile
                pl.BlockSpec((1, 1, Cout, 2), lambda b, l: (b, l, 0, 0)), # h halos
                pl.BlockSpec((1, Cout, 3), lambda b, l: (b, 0, 0)),       # packed params
                w2_spec,                                                  # conv2 w
                pl.BlockSpec((1, C, tl), lambda b, l: (b, 0, l)),         # residual x
            ],
            out_specs=pl.BlockSpec((1, Cout, tl), lambda b, l: (b, 0, l))),
        compiler_params=cparams,
    )(h, hhal, pp2, w2, x)

    return out


def ref_forward(x, emb, params, eps=1e-6):
    """Pure-JAX reference mirroring the PyTorch ResBlock forward."""
    C = x.shape[1]
    Cout = params['conv1_w'].shape[0]

    def gn(h, w, b, g):
        B, Ch, L = h.shape
        hg = h.reshape(B, g, (Ch // g) * L)
        mean = hg.mean(-1, keepdims=True)
        var = hg.var(-1, keepdims=True)
        hn = (hg - mean) / jnp.sqrt(var + eps)
        hn = hn.reshape(B, Ch, L)
        return hn * w[None, :, None] + b[None, :, None]

    def silu(v):
        return v * jax.nn.sigmoid(v)

    def conv(h, w, b):
        y = lax.conv_general_dilated(h, w, (1,), [(1, 1)],
                                     dimension_numbers=('NCH', 'OIH', 'NCH'))
        return y + b[None, :, None]

    h = conv(silu(gn(x, params['gn1_w'], params['gn1_b'], _num_groups(C))),
             params['conv1_w'], params['conv1_b'])
    e = silu(emb) @ params['emb_w'].T + params['emb_b']
    h = h + e[:, :, None]
    h = gn(h, params['gn2_w'], params['gn2_b'], _num_groups(Cout))
    h = silu(h)
    h = conv(h, params['conv2_w'], params['conv2_b'])
    return x + h


if __name__ == "__main__":
    def make_params(key, C, Cout, E):
        ks = jax.random.split(key, 10)
        # NOTE: the PyTorch module zero-initializes the final conv (zero_module);
        # deterministic non-zero weights are used so the computation is exercised.
        return {
            'gn1_w': 1.0 + 0.1 * jax.random.normal(ks[0], (C,), jnp.float32),
            'gn1_b': 0.1 * jax.random.normal(ks[1], (C,), jnp.float32),
            'conv1_w': 0.3 * jax.random.normal(ks[2], (Cout, C, 3), jnp.float32),
            'conv1_b': 0.1 * jax.random.normal(ks[3], (Cout,), jnp.float32),
            'emb_w': 0.3 * jax.random.normal(ks[4], (Cout, E), jnp.float32),
            'emb_b': 0.1 * jax.random.normal(ks[5], (Cout,), jnp.float32),
            'gn2_w': 1.0 + 0.1 * jax.random.normal(ks[6], (Cout,), jnp.float32),
            'gn2_b': 0.1 * jax.random.normal(ks[7], (Cout,), jnp.float32),
            'conv2_w': 0.3 * jax.random.normal(ks[8], (Cout, Cout, 3), jnp.float32),
            'conv2_b': 0.1 * jax.random.normal(ks[9], (Cout,), jnp.float32),
        }

    def run_case(seed_key, B, C, E, L, tl, mxu_dtype, atol, rtol, name):
        kp, kx, ke = jax.random.split(seed_key, 3)
        params = make_params(kp, C, C, E)
        x = jax.random.normal(kx, (B, C, L), jnp.float32)
        emb = jax.random.normal(ke, (B, E), jnp.float32)
        out = resblock_forward(x, emb, params, mxu_dtype=mxu_dtype, tl=tl)
        out = jax.block_until_ready(out)
        ref = ref_forward(x, emb, params)
        assert out.shape == ref.shape
        err = jnp.max(jnp.abs(out - ref))
        assert jnp.allclose(out, ref, atol=atol, rtol=rtol), (
            f"{name}: max abs diff {err}")

    root = jax.random.PRNGKey(0)
    k1, k2 = jax.random.split(root)

    # Small single-tile case, f32 MXU operands (tight check of the math).
    run_case(k1, B=2, C=8, E=16, L=128, tl=None,
             mxu_dtype=jnp.float32, atol=2e-3, rtol=2e-3, name="small_f32")
    # Same case with bf16 MXU operands + bf16 h storage (default fast path).
    run_case(k1, B=2, C=8, E=16, L=128, tl=None,
             mxu_dtype=jnp.bfloat16, atol=1.5e-1, rtol=5e-2, name="small_bf16")
    # Multi-tile case exercising L-tiling, halos and edge-column plumbing.
    run_case(k2, B=2, C=16, E=8, L=1024, tl=256,
             mxu_dtype=jnp.float32, atol=2e-3, rtol=2e-3, name="tiled_f32")

    print("KERNEL_OK")
</pallas_src>

<mosaic_0001>
module attributes {stable_mosaic.version = 11 : i64} {
  func.func @_pass1_kernel(%arg0: i32, %arg1: i32, %arg2: memref<1x8x128xf32, #tpu.memory_space<vmem>>, %arg3: memref<1x1x8x2xf32, #tpu.memory_space<vmem>>, %arg4: memref<1x8x3xf32, #tpu.memory_space<vmem>>, %arg5: memref<8x24xf32, #tpu.memory_space<vmem>>, %arg6: memref<1x8x128xf32, #tpu.memory_space<vmem>>, %arg7: memref<1x1x8x4xf32, #tpu.memory_space<vmem>>) attributes {dimension_semantics = [#tpu.dimension_semantics<parallel>, #tpu.dimension_semantics<parallel>], iteration_bounds = array<i64: 2, 1>, scalar_prefetch = 0 : i64, scratch_operands = 0 : i64, tpu.core_type = #tpu.core_type<tc>, window_params = [{transform_indices = @transform_0, window_bounds = array<i64: 1, 8, 128>}, {transform_indices = @transform_1, window_bounds = array<i64: 1, 1, 8, 2>}, {transform_indices = @transform_2, window_bounds = array<i64: 1, 8, 3>}, {pipeline_mode = #tpu.pipeline_mode<synchronous>, transform_indices = @transform_3, window_bounds = array<i64: 8, 24>}, {transform_indices = @transform_4, window_bounds = array<i64: 1, 8, 128>}, {transform_indices = @transform_5, window_bounds = array<i64: 1, 1, 8, 4>}]} {
    %c0 = arith.constant 0 : index
    %c0_0 = arith.constant 0 : index
    %c0_1 = arith.constant 0 : index
    %0 = vector.load %arg2[%c0, %c0_0, %c0_1] : memref<1x8x128xf32, #tpu.memory_space<vmem>>, vector<1x8x128xf32>
    %1 = vector.shape_cast %0 : vector<1x8x128xf32> to vector<8x128xf32>
    %c0_2 = arith.constant 0 : index
    %c0_3 = arith.constant 0 : index
    %c0_4 = arith.constant 0 : index
    %2 = vector.load %arg4[%c0_2, %c0_3, %c0_4] : memref<1x8x3xf32, #tpu.memory_space<vmem>>, vector<1x8x3xf32>
    %3 = vector.shape_cast %2 : vector<1x8x3xf32> to vector<8x3xf32>
    %4 = vector.extract_strided_slice %3 {offsets = [0, 0], sizes = [8, 1], strides = [1, 1]} : vector<8x3xf32> to vector<8x1xf32>
    %5 = vector.extract_strided_slice %3 {offsets = [0, 1], sizes = [8, 1], strides = [1, 1]} : vector<8x3xf32> to vector<8x1xf32>
    %6 = vector.extract_strided_slice %3 {offsets = [0, 2], sizes = [8, 1], strides = [1, 1]} : vector<8x3xf32> to vector<8x1xf32>
    %7 = vector.broadcast %4 : vector<8x1xf32> to vector<8x128xf32>
    %8 = arith.mulf %1, %7 : vector<8x128xf32>
    %9 = vector.broadcast %5 : vector<8x1xf32> to vector<8x128xf32>
    %10 = arith.addf %8, %9 : vector<8x128xf32>
    %cst = arith.constant 5.000000e-01 : f32
    %11 = vector.broadcast %cst : f32 to vector<8x128xf32>
    %12 = arith.mulf %11, %10 : vector<8x128xf32>
    %13 = math.tanh %12 : vector<8x128xf32>
    %cst_5 = arith.constant 5.000000e-01 : f32
    %14 = vector.broadcast %cst_5 : f32 to vector<8x128xf32>
    %15 = arith.mulf %14, %13 : vector<8x128xf32>
    %cst_6 = arith.constant 5.000000e-01 : f32
    %16 = vector.broadcast %cst_6 : f32 to vector<8x128xf32>
    %17 = arith.addf %15, %16 : vector<8x128xf32>
    %18 = arith.mulf %10, %17 : vector<8x128xf32>
    %c0_7 = arith.constant 0 : index
    %c0_8 = arith.constant 0 : index
    %c0_9 = arith.constant 0 : index
    %c0_10 = arith.constant 0 : index
    %19 = vector.load %arg3[%c0_7, %c0_8, %c0_9, %c0_10] : memref<1x1x8x2xf32, #tpu.memory_space<vmem>>, vector<1x1x8x1xf32>
    %20 = vector.shape_cast %19 : vector<1x1x8x1xf32> to vector<8x1xf32>
    %c0_11 = arith.constant 0 : index
    %c0_12 = arith.constant 0 : index
    %c0_13 = arith.constant 0 : index
    %c1 = arith.constant 1 : index
    %21 = vector.load %arg3[%c0_11, %c0_12, %c0_13, %c1] : memref<1x1x8x2xf32, #tpu.memory_space<vmem>>, vector<1x1x8x1xf32>
    %22 = vector.shape_cast %21 : vector<1x1x8x1xf32> to vector<8x1xf32>
    %c0_i32 = arith.constant 0 : i32
    %23 = arith.cmpi eq, %arg1, %c0_i32 : i32
    %24 = arith.mulf %20, %4 : vector<8x1xf32>
    %25 = arith.addf %24, %5 : vector<8x1xf32>
    %cst_14 = arith.constant 5.000000e-01 : f32
    %26 = vector.broadcast %cst_14 : f32 to vector<8x1xf32>
    %27 = arith.mulf %26, %25 : vector<8x1xf32>
    %28 = math.tanh %27 : vector<8x1xf32>
    %cst_15 = arith.constant 5.000000e-01 : f32
    %29 = vector.broadcast %cst_15 : f32 to vector<8x1xf32>
    %30 = arith.mulf %29, %28 : vector<8x1xf32>
    %cst_16 = arith.constant 5.000000e-01 : f32
    %31 = vector.broadcast %cst_16 : f32 to vector<8x1xf32>
    %32 = arith.addf %30, %31 : vector<8x1xf32>
    %33 = arith.mulf %25, %32 : vector<8x1xf32>
    %cst_17 = arith.constant 0.000000e+00 : f32
    %34 = vector.broadcast %cst_17 : f32 to vector<8x1xf32>
    %35 = arith.select %23, %34, %33 : vector<8x1xf32>
    %c0_i32_18 = arith.constant 0 : i32
    %36 = arith.cmpi eq, %arg1, %c0_i32_18 : i32
    %37 = arith.mulf %22, %4 : vector<8x1xf32>
    %38 = arith.addf %37, %5 : vector<8x1xf32>
    %cst_19 = arith.constant 5.000000e-01 : f32
    %39 = vector.broadcast %cst_19 : f32 to vector<8x1xf32>
    %40 = arith.mulf %39, %38 : vector<8x1xf32>
    %41 = math.tanh %40 : vector<8x1xf32>
    %cst_20 = arith.constant 5.000000e-01 : f32
    %42 = vector.broadcast %cst_20 : f32 to vector<8x1xf32>
    %43 = arith.mulf %42, %41 : vector<8x1xf32>
    %cst_21 = arith.constant 5.000000e-01 : f32
    %44 = vector.broadcast %cst_21 : f32 to vector<8x1xf32>
    %45 = arith.addf %43, %44 : vector<8x1xf32>
    %46 = arith.mulf %38, %45 : vector<8x1xf32>
    %cst_22 = arith.constant 0.000000e+00 : f32
    %47 = vector.broadcast %cst_22 : f32 to vector<8x1xf32>
    %48 = arith.select %36, %47, %46 : vector<8x1xf32>
    %49 = vector.extract_strided_slice %18 {offsets = [0, 0], sizes = [8, 127], strides = [1, 1]} : vector<8x128xf32> to vector<8x127xf32>
    %50 = tpu.concatenate %35, %49 in 1 : vector<8x1xf32>, vector<8x127xf32> -> vector<8x128xf32>
    %51 = vector.extract_strided_slice %18 {offsets = [0, 1], sizes = [8, 127], strides = [1, 1]} : vector<8x128xf32> to vector<8x127xf32>
    %52 = tpu.concatenate %51, %48 in 1 : vector<8x127xf32>, vector<8x1xf32> -> vector<8x128xf32>
    %53 = tpu.concatenate %50, %18, %52 in 0 : vector<8x128xf32>, vector<8x128xf32>, vector<8x128xf32> -> vector<24x128xf32>
    %c0_23 = arith.constant 0 : index
    %c0_24 = arith.constant 0 : index
    %54 = vector.load %arg5[%c0_23, %c0_24] : memref<8x24xf32, #tpu.memory_space<vmem>>, vector<8x24xf32>
    %cst_25 = arith.constant dense<0.000000e+00> : vector<8x128xf32>
    %55 = tpu.matmul %54, %53, %cst_25 {dimension_numbers = #tpu.dot_dimension_numbers<[1], [0], [0], [1], [0, 0, 1, 1], [], []>} : vector<8x24xf32>, vector<24x128xf32>, vector<8x128xf32> -> vector<8x128xf32>
    %56 = vector.broadcast %6 : vector<8x1xf32> to vector<8x128xf32>
    %57 = arith.addf %55, %56 : vector<8x128xf32>
    %c0_26 = arith.constant 0 : index
    %c0_27 = arith.constant 0 : index
    %c0_28 = arith.constant 0 : index
    %58 = vector.load %arg6[%c0_26, %c0_27, %c0_28] : memref<1x8x128xf32, #tpu.memory_space<vmem>>, vector<1x8x128xf32>
    %59 = vector.shape_cast %58 : vector<1x8x128xf32> to vector<8x128xf32>
    %60 = vector.shape_cast %57 : vector<8x128xf32> to vector<1x8x128xf32>
    tpu.vector_store %arg6[%c0_26, %c0_27, %c0_28], %60 {strides = array<i32>} : memref<1x8x128xf32, #tpu.memory_space<vmem>>, vector<1x8x128xf32>,
    %cst_29 = arith.constant dense<0.000000e+00> : vector<8xf32>
    %61 = vector.multi_reduction <add>, %57, %cst_29 [1] : vector<8x128xf32> to vector<8xf32>
    %62 = vector.shape_cast %61 : vector<8xf32> to vector<8x1xf32>
    %63 = arith.mulf %57, %57 : vector<8x128xf32>
    %cst_30 = arith.constant dense<0.000000e+00> : vector<8xf32>
    %64 = vector.multi_reduction <add>, %63, %cst_30 [1] : vector<8x128xf32> to vector<8xf32>
    %65 = vector.shape_cast %64 : vector<8xf32> to vector<8x1xf32>
    %66 = vector.extract_strided_slice %57 {offsets = [0, 0], sizes = [8, 1], strides = [1, 1]} : vector<8x128xf32> to vector<8x1xf32>
    %67 = vector.extract_strided_slice %57 {offsets = [0, 127], sizes = [8, 1], strides = [1, 1]} : vector<8x128xf32> to vector<8x1xf32>
    %68 = tpu.concatenate %62, %65, %66, %67 in 1 : vector<8x1xf32>, vector<8x1xf32>, vector<8x1xf32>, vector<8x1xf32> -> vector<8x4xf32>
    %c0_31 = arith.constant 0 : index
    %c0_32 = arith.constant 0 : index
    %c0_33 = arith.constant 0 : index
    %c0_34 = arith.constant 0 : index
    %69 = vector.load %arg7[%c0_31, %c0_32, %c0_33, %c0_34] : memref<1x1x8x4xf32, #tpu.memory_space<vmem>>, vector<1x1x8x4xf32>
    %70 = vector.shape_cast %69 : vector<1x1x8x4xf32> to vector<8x4xf32>
    %71 = vector.shape_cast %68 : vector<8x4xf32> to vector<1x1x8x4xf32>
    tpu.vector_store %arg7[%c0_31, %c0_32, %c0_33, %c0_34], %71 {strides = array<i32>} : memref<1x1x8x4xf32, #tpu.memory_space<vmem>>, vector<1x1x8x4xf32>,
    return
  }
  func.func @transform_0(%arg0: i32, %arg1: i32) -> (i32, i32, i32) {
    %c0_i32 = arith.constant 0 : i32
    %c0_i32_0 = arith.constant 0 : i32
    return %arg0, %c0_i32, %arg1 : i32, i32, i32
  }
  func.func @transform_1(%arg0: i32, %arg1: i32) -> (i32, i32, i32, i32) {
    %c0_i32 = arith.constant 0 : i32
    %c0_i32_0 = arith.constant 0 : i32
    %c0_i32_1 = arith.constant 0 : i32
    return %arg0, %arg1, %c0_i32, %c0_i32_0 : i32, i32, i32, i32
  }
  func.func @transform_2(%arg0: i32, %arg1: i32) -> (i32, i32, i32) {
    %c0_i32 = arith.constant 0 : i32
    %c0_i32_0 = arith.constant 0 : i32
    %c0_i32_1 = arith.constant 0 : i32
    return %arg0, %c0_i32, %c0_i32_0 : i32, i32, i32
  }
  func.func @transform_3(%arg0: i32, %arg1: i32) -> (i32, i32) {
    %c0_i32 = arith.constant 0 : i32
    %c0_i32_0 = arith.constant 0 : i32
    %c0_i32_1 = arith.constant 0 : i32
    return %c0_i32, %c0_i32_0 : i32, i32
  }
  func.func @transform_4(%arg0: i32, %arg1: i32) -> (i32, i32, i32) {
    %c0_i32 = arith.constant 0 : i32
    %c0_i32_0 = arith.constant 0 : i32
    return %arg0, %c0_i32, %arg1 : i32, i32, i32
  }
  func.func @transform_5(%arg0: i32, %arg1: i32) -> (i32, i32, i32, i32) {
    %c0_i32 = arith.constant 0 : i32
    %c0_i32_0 = arith.constant 0 : i32
    %c0_i32_1 = arith.constant 0 : i32
    return %arg0, %arg1, %c0_i32, %c0_i32_0 : i32, i32, i32, i32
  }
}

</mosaic_0001>

<bundles_post_ra>
// kernel: tpu_custom_call.1
= control target key start
LH: loop header
LB: loop body
LE: loop exit
PB: predicated region body
PF: predicated region fallthrough
CT: control target
= control target key end

     0   :  { %11 = vsyncpa [#allocation3], 0  ;;  %s973_s0 = inlined_call_operand.vmem [shape: f32[2,8,128], index: 0, kind: input, shape index: {}]   ;;  %s974_s1 = inlined_call_operand.vmem [shape: f32[2,1,8,2], index: 1, kind: input, shape index: {}]   ;;  %s975_s2 = inlined_call_operand.vmem [shape: f32[2,8,3], index: 2, kind: input, shape index: {}]   ;;  %s976_s3 = inlined_call_operand.vmem [shape: f32[8,24], index: 3, kind: input, shape index: {}]   ;;  %s977_s4 = inlined_call_operand.hbm [shape: f32[2,8,128], index: 4, kind: output, shape index: {0}]   ;;  %s978_s5 = inlined_call_operand.vmem [shape: f32[2,1,8,4], index: 5, kind: output, shape index: {1}]  }
   0x1   :  { %13 = vsyncpa [#allocation3 + $0x1], 0  ;;  %s851_s18 = smov 0   ;;  %s853_s19 = smov 0  }
   0x2   :  { %s855_s20 = smov 0   ;;  %s857_s1 = smov 0  }
   0x3   :  { %s859_s21 = smov 0   ;;  %s861_s22 = smov 0  }
   0x4 LB: > { %s622_s23 = sadd.s32 4294967295, %s806_s22   ;;  %s623_s24 = sadd.s32 4294967294, %s806_s22   ;;  %s806_s22 = sphi %s861_s22, %s19_s22   ;;  %s802_s21 = sphi %s859_s21, %s985_s21   ;;  %s798_s1 = sphi %s857_s1, %s984_s1   ;;  %s794_s20 = sphi %s855_s20, %s983_s20   ;;  %s790_s19 = sphi %s853_s19, %s982_s19   ;;  %s786_s18 = sphi %s851_s18, %s981_s18  }
   0x5   : > { %s31_s25 = sadd.s32 1, %s802_s21  ;;  %s143_s26 = sadd.s32 1, %s794_s20 }
   0x6   : > { %p33_p0 = scmp.ge.s32.totalorder %s31_s25, 2  ;;  %p153_p1 = scmp.ne.s32.totalorder %s794_s20, %s790_s19 }
   0x7   : > { %p154_p2 = scmp.eq.s32.totalorder %s622_s23, 1  ;;  %p159_p3 = scmp.ne.s32.totalorder %s790_s19, %s786_s18 }
   0x8   : > { %s987_s25 = smov (%p33_p0, %s31_s25), 0  ;;  %p160_p5 = scmp.eq.s32.totalorder %s623_s24, 1 }
   0x9   : > { %p891_p4 = por %p154_p2, %p153_p1  ;;  %s138_s28 = ssub.s32 %s802_s21, %s987_s25 }
   0xa   : > { %p626_p6 = scmp.ge.s32.totalorder %s806_s22, 1  ;;  %p141_p7 = scmp.eq.s32.totalorder %s138_s28, 0 }
   0xb   : > { %p898_p8 = por %p160_p5, %p159_p3  ;;  %p236_p9 = scmp.lt.s32.totalorder %s806_s22, 3 }
   0xc   : > { %s904_s30 = scalar_select %p141_p7, %s794_s20, %s143_s26  }
   0xd   : > { %p237_p10 = pnand %p626_p6, %p236_p9 }
   0xe   : > { %p284_p11 = scmp.lt.s32.totalorder (!%p237_p10), %s798_s1, 1  ;;  %v808_v0 = vmov (!%p237_p10), 0   ;;  %v809_v2 = vmov (!%p237_p10), 1   ;;  %v810_v9 = vmov (!%p237_p10), 0.0|0.0   ;;  %vm811_vm0 = vmmov (!%p237_p10), 0   ;;  %s814_s14 = smov (!%p237_p10), 1  }
   0xf   : > { %240 = sbr.rel (%p237_p10) target bundleno = 670 (0x29e), region = 36  ;;  %723 = vset.pattern.permute.xlu0 (!%p237_p10), %v808_v0  ;;  %652 = vmatprep.subr.bf16.mxu0 (!%p237_p10), %v810_v9  ;;  %v812_v13 = vmov (!%p237_p10), 0.0   ;;  %v813_v15 = vmov (!%p237_p10), 2   ;;  %s815_s15 = smov (!%p237_p10), 127   ;;  %vm358_vm1 = vcmask (!%p237_p10), 7168   ;;  %vm817_vm3 = vmmov (!%p237_p10), 1  }
  0x10   : > { %649 = vmatprep.mubr.msk.f32.mxu0 (!%p237_p10), %vm811_vm0, %v812_v13  ;;  %s816_s16 = smov (!%p237_p10), 126   ;;  %vm632_vm2 = vmneg (!%p237_p10), %vm358_vm1  ;;  %vm367_vm5 = vcmask (!%p237_p10), 1039360   ;;  %v369_v20 = vld [vmem:[%s976_s3] sm:$0xff] (!%p237_p10)  ;;  %vm374_vm6 = vcmask (!%p237_p10), 195584   ;;  %s272_s24 = sand.u32 (!%p237_p10), 1, %s790_s19  }
  0x11   : > { %vm654_vm4 = vmpackc.low (!%p237_p10), %vm817_vm3, %vm632_vm2  ;;  %s627_s26 = sshll.u32 (!%p237_p10), %s272_s24, 3  ;;  %s636_s8 = sshll.u32 (!%p237_p10), %s798_s1, 7 }
  0x12   : > { %s274_s28 = scalar_lea.vmem (!%p237_p10), [#allocation2], %s627_s26  ;;  %s927_s12 = scalar_lea.hbm (!%p237_p10), %s977_s4, %s636_s8 }
  0x13   : > { %s490_s9 = sshll.u32 (!%p237_p10), %s274_s28, 4  ;;  %s491_s9 = int_to_ptr.vmem [resolvable:$true] %s490_s9 }
  0x16   : > { %s285_s6 = scalar_select %p284_p11, %s798_s1, 1 }
  0x18   : > { %s908_s7 = sshll.u32 %s285_s6, 3  ;;  %s818_s6 = smov 2  }
  0x19   : > { %s301_s10 = scalar_lea.vmem %s975_s2, %s908_s7  ;;  %s290_s13 = scalar_lea.vmem %s973_s0, %s908_s7 }
  0x1a   : > { %v310_v1 = vld [vmem:[%s301_s10] sm:$0xff] }
  0x1b   : > { %313 = vperm.xlu0 %723, %v310_v1   ;;  %v309_v4 = vld [vmem:[%s290_s13] sm:$0xff]  ;;  %s469_s13 = scalar_lea.sflag [#allocation3], %s272_s24 }
  0x1f   : > { %724 = vset.pattern.permute.xlu0 %v809_v2 }
  0x20   : > { %318 = vperm.xlu0 %724, %v310_v1  }
  0x24   : > { %725 = vset.pattern.permute.xlu0 %v813_v15 }
  0x25   : > { %371 = vperm.xlu0 %725, %v310_v1  }
  0x9a   : > { %v314_v3 = vpop.permute.xlu0 %313 }
  0x9b   : > { %v316_v5 = vmul.f32 %v314_v3, %v309_v4 }
  0x9f   : > { %v319_v6 = vpop.permute.xlu0 %318 }
  0xa0   : > { %v321_v7 = vadd.f32 %v319_v6, %v316_v5 }
  0xa2   : > { %v322_v8 = vmul.f32 0.5, %v321_v7 }
  0xa4   : > { %726 = vtanh.f32 %v322_v8  ;;  %v372_v22 = vpop.permute.xlu0 %371 }
  0xae   : > { %v727_v10 = vpop.eup %726 }
  0xaf   : > { %v324_v11 = vmul.f32 0.5, %v727_v10 }
  0xb1   : > { %v325_v12 = vadd.f32 0.5, %v324_v11 }
  0xb3   : > { %v326_v14 = vmul.f32 %v325_v12, %v321_v7 }
  0xb5   : > { %355 = vrot.lane.b32.xlu1 %v326_v14, %s814_s14  ;;  %s728_s14 = scalar_lea.vmem %s491_s9, 128 }
  0xb6   : > { %p729_p12 = scmp.ne.s32.totalorder %s491_s9, %s728_s14 }
  0xb8   : > { %p730_p13 = pnand %p729_p12, %p891_p4 }
  0xb9   : > { %360 = vrot.lane.b32.xlu1 %v326_v14, %s815_s15  ;;  %s819_s15 = smov [#allocation2]  }
  0xba   : > { %p731_p0 = pneg %p730_p13 }
  0xbd   : > { %364 = vrot.lane.b32.xlu1 %v812_v13, %s816_s16  ;;  %s732_s16 = sshll.u32 %s819_s15, 4  ;;  %s733_s16 = int_to_ptr.vmem [resolvable:$false] %s732_s16 }
  0xbe   : > { %s734_s17 = scalar_lea.vmem %s733_s16, 256  ;;  %p735_p1 = scmp.lt.s32.totalorder %s491_s9, %s733_s16 }
  0xbf   : > { %p736_p2 = scmp.lt.s32.totalorder %s734_s17, %s728_s14 }
  0xc1   : > { %p737_p3 = por %p736_p2, %p735_p1 }
  0xc3   : > { %p738_p5 = pnand %p737_p3, %p731_p0 }
 0x127   : > { %v356_v16 = vpop.permute.xlu1 %355 }
 0x128   : > { %v653_v17 = vpack.c.bf16 %v326_v14, %v356_v16 }
 0x12a   : > { %655 = vmatpush3.bf16.msk.msra.mxu0 %vm654_vm4, %v653_v17 }
 0x12b   : > { %v361_v18 = vpop.permute.xlu1 %360  ;;  %647 = vmatprep.subr.mxu0 %v812_v13 }
 0x12f   : > { %v365_v19 = vpop.permute.xlu1 %364 }
 0x130   : > { %v368_v21 = vsel %vm367_vm5, %v361_v18, %v365_v19 }
 0x131   : > { %648 = vmatpush3.msra.mxu0 %v368_v21 }
 0x132   : > { %650 = vmatmul.mubr.msk.f32.vlgmr.msra.gmra.mrb[0].mxu0 %vm374_vm6, %v369_v20 }
 0x205   : > { %v444_v23 = vpop.f32.mrb[0].mxu0 }
 0x206   : > { %v445_v24 = vadd.f32 %v444_v23, %v372_v22  ;;  %v651_v25 = vpop.f32.mrb[1].mxu0 }
 0x208   : > { %449 = vadd.xlane.f32.xlu1 %v445_v24  ;;  %v451_v26 = vmul.f32 %v445_v24, %v445_v24  ;;  %448 = vst [vmem:[%s274_s28] sm:$0xff] %v445_v24 }
 0x20a   : > { %452 = vadd.xlane.f32.xlu0 %v451_v26 }
 0x219   : > { %455 = vrot.lane.b32.xlu1 %v445_v24, %s818_s6 }
 0x21a   : > { %741 = shalt.err (!%p738_p5)
}
 0x21b   : > { %s742_s1 = scalar_lea.hbm %s927_s12, 128  ;;  %s746_s26 = scalar_lea.hbm %s977_s4, 256 }
 0x21c   : > { %p743_p6 = scmp.ne.s32.totalorder %s927_s12, %s742_s1  ;;  %p747_p10 = scmp.lt.u32.totalorder %s927_s12, %s977_s4 }
 0x21d   : > { %p748_p11 = scmp.lt.u32.totalorder %s746_s26, %s742_s1  ;;  %p750_p13 = scmp.lt.u32.totalorder %s742_s1, %s927_s12 }
 0x21e   : > { %p744_p7 = pnand %p743_p6, %p891_p4 }
 0x21f   : > { %p749_p12 = por %p748_p11, %p747_p10 }
 0x220   : > { %p745_p9 = pneg %p744_p7 }
 0x221   : > { %p751_p0 = por %p750_p13, %p749_p12 }
 0x223   : > { %p752_p1 = pnand %p751_p0, %p745_p9 }
 0x225   : > { %755 = shalt.err (!%p752_p1)
}
 0x226   : > { %656 = dma.vmem_to_hbm [thread:$0]  (%p891_p4), %s491_s9, 128, %s927_s12, %s469_s13   ;;  %vm462_vm7 = vcmask 15360   ;;  %vm464_vm8 = vcmask 23552   ;;  %vm466_vm9 = vcmask 31744  }
 0x227   : > { %s820_s8 = smov 4   ;;  %s308_s14 = scalar_lea.vmem %s978_s5, %s908_s7 }
 0x228   : > { %458 = vrot.lane.b32.xlu0 %v445_v24, %s820_s8 }
 0x295   : > { %v450_v27 = vpop.xlane.xlu1 %449 }
 0x297   : > { %v453_v28 = vpop.xlane.xlu0 %452 }
 0x298   : > { %v461_v29 = vsel %vm358_vm1, %v450_v27, %v453_v28 }
 0x299   : > { %v456_v30 = vpop.permute.xlu1 %455 }
 0x29a   : > { %v463_v31 = vsel %vm462_vm7, %v461_v29, %v456_v30 }
 0x29b   : > { %v459_v32 = vpop.permute.xlu0 %458 }
 0x29c   : > { %v465_v33 = vsel %vm464_vm8, %v463_v31, %v459_v32 }
 0x29d   : > { %467 = vst.msk [vmem:[%s308_s14] sm:$0xff] %vm466_vm9, %v465_v33 }
 0x29e PF: > { %p662_p4 = scmp.ge.s32.totalorder %s806_s22, 2  ;;  %s505_s27 = sand.u32 1, %s786_s18  }
 0x29f   : > { %s506_s9 = scalar_lea.sflag [#allocation3], %s505_s27 }
 0x2a0   : > { %p659_p2 = pnand %p662_p4, %p898_p8 }
 0x2a2   : > { %781 = dma.done.wait (!%p659_p2), %s506_s9, 128  }
 0x2a3   : > { %783 = vsyncadd (!%p659_p2), %s506_s9, 4294967168  ;;  %s19_s22 = sadd.s32 1, %s806_s22   ;;  %s981_s18 = smov %s790_s19 }
 0x2a4   : > { %p16_p3 = scmp.ge.s32.totalorder %s19_s22, 4   ;;  %s982_s19 = smov %s794_s20 }
 0x2a5   : > { %s983_s20 = smov %s904_s30  ;;  %s984_s1 = smov %s802_s21 }
 0x2a6   : > { %s985_s21 = smov %s987_s25  ;;  %18 = sbr.rel (!%p16_p3) target bundleno = 4 (0x4), region = 89 }
 0x2ad   :  { %521 = vsyncpa [#allocation3], 1 }
 0x2ae   :  { %523 = vsyncpa [#allocation3 + $0x1], 1 }

</bundles_post_ra>
